<compile_context>
chip_gen: v7x
topology: tpu7x:2x2x1
jax: 0.10.0
libtpu: 0.0.40
codegen_flags: <defaults>
</compile_context>

<pallas_src>
import jax
import jax.numpy as jnp
import numpy as np
from jax.experimental import pallas as pl
from jax.experimental.pallas import tpu as pltpu


def _up_conv_kernel(x_ref, w_ref, p_ref, o_ref):
    # x_ref: (1, H+2, W*Cin)       bf16  original-res input, 1 zero row pad top/bottom
    # w_ref: (1, 3, W*Cin, 2W*Cout) bf16  banded weights for this row phase
    #                                      (upsample + kx taps + column pad + BN scale folded in)
    # p_ref: (1, 2W*Cout)           f32   fused conv-bias + BN shift, tiled over output W
    # o_ref: (1, 1, H, 2W*Cout)           output rows of this row phase (lane-dense)
    H = o_ref.shape[2]

    # 3 static row taps (one tap slab is all-zero per phase; keeping it static
    # avoids dynamic sublane-offset loads).  bf16 operands, f32 accumulation.
    acc = jnp.dot(x_ref[0, 0:H, :], w_ref[0, 0], preferred_element_type=jnp.float32)
    acc = acc + jnp.dot(x_ref[0, 1:1 + H, :], w_ref[0, 1],
                        preferred_element_type=jnp.float32)
    acc = acc + jnp.dot(x_ref[0, 2:2 + H, :], w_ref[0, 2],
                        preferred_element_type=jnp.float32)

    # BN scale already folded into the band columns -> epilogue is add + ReLU.
    o_ref[0, 0] = jnp.maximum(acc + p_ref[...], 0.0).astype(o_ref.dtype)


def prepare_up_conv(params, spatial_w, eps=1e-5):
    """One-time (per layer / per input width) weight prep, host-side.

    params = (w, b, gamma, beta, running_mean, running_var), conv weight in
    PyTorch OIHW layout.  Returns:
      w_band: (2, 3, W*Cin, 2W*Cout) bf16 banded weights (row-phase major)
      p:      (1, 2W*Cout)           f32  fused bias/BN shift

    Fusions encoded in w_band:
      * nearest 2x upsample (row/column phase decomposition)
      * 3x3 conv kx taps as a banded matrix over the W axis (incl. 1-px pad)
      * eval-mode BatchNorm scale gamma/sqrt(var+eps)
    """
    w, b, g, beta, m, v = (np.asarray(t, np.float32) for t in params)
    Cout, Cin, KH, KW = w.shape
    assert (KH, KW) == (3, 3)
    W = int(spatial_w)

    scale = g / np.sqrt(v + eps)                 # (Cout,)
    shift = beta + (b - m) * scale               # (Cout,)
    w_eff = w * scale[:, None, None, None]       # fold BN scale into weights
    wt = np.transpose(w_eff, (2, 3, 1, 0))       # (ky, kx, Cin, Cout)
    z = np.zeros_like(wt[0])

    # Row-phase fold of the nearest upsample.  Output row 2*hb+ph reads padded
    # input rows hb+dr, dr in {0,1,2}:
    #   ph=0: dr=0 -> ky0,  dr=1 -> ky1+ky2, dr=2 -> 0
    #   ph=1: dr=0 -> 0,    dr=1 -> ky0+ky1, dr=2 -> ky2
    rph = np.stack([np.stack([wt[0], wt[1] + wt[2], z]),
                    np.stack([z, wt[0] + wt[1], wt[2]])])   # (2, 3, kx, Cin, Cout)

    # Column-phase fold + banding: output col 2*wb+pw reads original cols
    #   pw=0: wb-1 -> kx0,      wb -> kx1+kx2
    #   pw=1: wb   -> kx0+kx1,  wb+1 -> kx2
    # (out-of-range taps dropped == the 1-px zero pad).
    band = np.zeros((2, 3, W, Cin, W, 2, Cout), np.float32)
    for wb in range(W):
        if wb > 0:
            band[:, :, wb - 1, :, wb, 0, :] += rph[:, :, 0]
        band[:, :, wb, :, wb, 0, :] += rph[:, :, 1] + rph[:, :, 2]
        band[:, :, wb, :, wb, 1, :] += rph[:, :, 0] + rph[:, :, 1]
        if wb + 1 < W:
            band[:, :, wb + 1, :, wb, 1, :] += rph[:, :, 2]

    # NOTE: for large W / channels, tile this band's output-W (N) dimension
    # (tile_w*2*Cout a multiple of 128) with an extra grid axis to bound its
    # O(W^2*Cin*Cout) VMEM footprint (64 MiB on v7x).
    w_band = jnp.asarray(band.reshape(2, 3, W * Cin, 2 * W * Cout)).astype(jnp.bfloat16)
    p = jnp.asarray(np.tile(shift, 2 * W)[None, :], dtype=jnp.float32)
    return w_band, p


def up_conv_forward(x_nchw, w_band, p, out_dtype=jnp.float32):
    """up_conv forward with precomputed (w_band, p).  NCHW in / NCHW out."""
    B, Cin, H, W = x_nchw.shape
    N = w_band.shape[-1]
    Cout = N // (2 * W)
    K = W * Cin

    # Glue (pure data movement, bf16 before pad): NCHW -> (B, H, W*Cin),
    # plus one zero row top/bottom for the row-phase taps.  No upsample, no
    # column pad - both live in w_band.
    x = jnp.transpose(x_nchw.astype(jnp.bfloat16), (0, 2, 3, 1)).reshape(B, H, K)
    x = jnp.pad(x, ((0, 0), (1, 1), (0, 0)))                  # (B, H+2, K)

    out = pl.pallas_call(
        _up_conv_kernel,
        out_shape=jax.ShapeDtypeStruct((B, 2, H, N), out_dtype),
        grid_spec=pltpu.PrefetchScalarGridSpec(
            num_scalar_prefetch=0,
            grid=(2, B),   # (row phase, batch); batch minor -> phase weight slab reused
            in_specs=[
                pl.BlockSpec((1, H + 2, K), lambda ph, bb: (bb, 0, 0)),
                pl.BlockSpec((1, 3, K, N), lambda ph, bb: (ph, 0, 0, 0)),
                pl.BlockSpec((1, N), lambda ph, bb: (0, 0)),
            ],
            out_specs=pl.BlockSpec((1, 1, H, N), lambda ph, bb: (bb, ph, 0, 0)),
        ),
        compiler_params=pltpu.CompilerParams(
            dimension_semantics=("parallel", "parallel")),
    )(x, w_band, p)

    # (B, ph, H, 2W*Cout) -> NCHW (single transpose; a NHWC consumer could skip it).
    out = out.reshape(B, 2, H, 2 * W, Cout)
    out = jnp.transpose(out, (0, 4, 2, 1, 3)).reshape(B, Cout, 2 * H, 2 * W)
    return out


def _reference_forward(x_nchw, params, eps=1e-5, match_bf16=True):
    """Pure-JAX reference (XLA conv), eval-mode BatchNorm.  With match_bf16 the
    operands are rounded through bf16 like the kernel's MXU operands."""
    w, b, g, beta, m, v = params
    scale = g / jnp.sqrt(v + eps)
    shift = beta + (b - m) * scale
    w_eff = (w * scale[:, None, None, None]).astype(jnp.float32)
    x = jnp.repeat(jnp.repeat(x_nchw.astype(jnp.float32), 2, axis=2), 2, axis=3)
    if match_bf16:
        x = x.astype(jnp.bfloat16).astype(jnp.float32)
        w_eff = w_eff.astype(jnp.bfloat16).astype(jnp.float32)
    y = jax.lax.conv_general_dilated(
        x, w_eff, window_strides=(1, 1), padding="SAME",
        dimension_numbers=("NCHW", "OIHW", "NCHW"))
    y = y + shift[None, :, None, None]
    return jnp.maximum(y, 0.0)


def _init_params(key, ch_in, ch_out):
    ks = jax.random.split(key, 6)
    w = 0.1 * jax.random.normal(ks[0], (ch_out, ch_in, 3, 3), jnp.float32)
    b = 0.1 * jax.random.normal(ks[1], (ch_out,), jnp.float32)
    g = 1.0 + 0.1 * jax.random.normal(ks[2], (ch_out,), jnp.float32)
    beta = 0.1 * jax.random.normal(ks[3], (ch_out,), jnp.float32)
    m = 0.1 * jax.random.normal(ks[4], (ch_out,), jnp.float32)
    v = 0.5 + jnp.abs(jax.random.normal(ks[5], (ch_out,), jnp.float32))
    return (w, b, g, beta, m, v)


if __name__ == "__main__":
    B, CH_IN, CH_OUT, H, W = 2, 4, 8, 16, 16

    key = jax.random.PRNGKey(0)
    k_x, k_p = jax.random.split(key)
    x = jax.random.normal(k_x, (B, CH_IN, H, W), jnp.float32)   # NCHW like PyTorch
    params = _init_params(k_p, CH_IN, CH_OUT)

    # TODO(synk): BatchNorm2d is implemented in eval mode (running stats); the
    # training-mode batch-statistics update has no place in this fused kernel.
    w_band, p = prepare_up_conv(params, spatial_w=W)            # once per layer
    fwd = jax.jit(lambda xx, wb, pp: up_conv_forward(xx, wb, pp))

    out = jax.block_until_ready(fwd(x, w_band, p))
    assert out.shape == (B, CH_OUT, 2 * H, 2 * W), out.shape

    ref = jax.block_until_ready(_reference_forward(x, params))
    # Slightly loose tol: the kernel rounds summed phase-weights to bf16 once,
    # the reference rounds the individual 3x3 weights.
    np.testing.assert_allclose(np.asarray(out), np.asarray(ref), atol=1e-2, rtol=1e-2)

    print("KERNEL_OK")
</pallas_src>

<mosaic_0001>
module attributes {stable_mosaic.version = 11 : i64} {
  func.func @_up_conv_kernel(%arg0: i32, %arg1: i32, %arg2: memref<1x18x64xbf16, #tpu.memory_space<vmem>>, %arg3: memref<1x3x64x256xbf16, #tpu.memory_space<vmem>>, %arg4: memref<1x256xf32, #tpu.memory_space<vmem>>, %arg5: memref<1x1x16x256xf32, #tpu.memory_space<vmem>>) attributes {dimension_semantics = [#tpu.dimension_semantics<parallel>, #tpu.dimension_semantics<parallel>], iteration_bounds = array<i64: 2, 2>, scalar_prefetch = 0 : i64, scratch_operands = 0 : i64, tpu.core_type = #tpu.core_type<tc>, window_params = [{transform_indices = @transform_0, window_bounds = array<i64: 1, 18, 64>}, {transform_indices = @transform_1, window_bounds = array<i64: 1, 3, 64, 256>}, {pipeline_mode = #tpu.pipeline_mode<synchronous>, transform_indices = @transform_2, window_bounds = array<i64: 1, 256>}, {transform_indices = @transform_3, window_bounds = array<i64: 1, 1, 16, 256>}]} {
    %c0 = arith.constant 0 : index
    %c0_0 = arith.constant 0 : index
    %c0_1 = arith.constant 0 : index
    %0 = vector.load %arg2[%c0, %c0_0, %c0_1] : memref<1x18x64xbf16, #tpu.memory_space<vmem>>, vector<1x16x64xbf16>
    %1 = vector.shape_cast %0 : vector<1x16x64xbf16> to vector<16x64xbf16>
    %c0_2 = arith.constant 0 : index
    %c0_3 = arith.constant 0 : index
    %c0_4 = arith.constant 0 : index
    %c0_5 = arith.constant 0 : index
    %2 = vector.load %arg3[%c0_2, %c0_3, %c0_4, %c0_5] : memref<1x3x64x256xbf16, #tpu.memory_space<vmem>>, vector<1x1x64x256xbf16>
    %3 = vector.shape_cast %2 : vector<1x1x64x256xbf16> to vector<64x256xbf16>
    %cst = arith.constant dense<0.000000e+00> : vector<16x256xf32>
    %4 = tpu.matmul %1, %3, %cst {dimension_numbers = #tpu.dot_dimension_numbers<[1], [0], [0], [1], [0, 0, 1, 1], [], []>} : vector<16x64xbf16>, vector<64x256xbf16>, vector<16x256xf32> -> vector<16x256xf32>
    %c0_6 = arith.constant 0 : index
    %c1 = arith.constant 1 : index
    %c0_7 = arith.constant 0 : index
    %5 = vector.load %arg2[%c0_6, %c1, %c0_7] : memref<1x18x64xbf16, #tpu.memory_space<vmem>>, vector<1x16x64xbf16>
    %6 = vector.shape_cast %5 : vector<1x16x64xbf16> to vector<16x64xbf16>
    %c0_8 = arith.constant 0 : index
    %c1_9 = arith.constant 1 : index
    %c0_10 = arith.constant 0 : index
    %c0_11 = arith.constant 0 : index
    %7 = vector.load %arg3[%c0_8, %c1_9, %c0_10, %c0_11] : memref<1x3x64x256xbf16, #tpu.memory_space<vmem>>, vector<1x1x64x256xbf16>
    %8 = vector.shape_cast %7 : vector<1x1x64x256xbf16> to vector<64x256xbf16>
    %cst_12 = arith.constant dense<0.000000e+00> : vector<16x256xf32>
    %9 = tpu.matmul %6, %8, %cst_12 {dimension_numbers = #tpu.dot_dimension_numbers<[1], [0], [0], [1], [0, 0, 1, 1], [], []>} : vector<16x64xbf16>, vector<64x256xbf16>, vector<16x256xf32> -> vector<16x256xf32>
    %10 = arith.addf %4, %9 : vector<16x256xf32>
    %c0_13 = arith.constant 0 : index
    %c2 = arith.constant 2 : index
    %c0_14 = arith.constant 0 : index
    %11 = vector.load %arg2[%c0_13, %c2, %c0_14] : memref<1x18x64xbf16, #tpu.memory_space<vmem>>, vector<1x16x64xbf16>
    %12 = vector.shape_cast %11 : vector<1x16x64xbf16> to vector<16x64xbf16>
    %c0_15 = arith.constant 0 : index
    %c2_16 = arith.constant 2 : index
    %c0_17 = arith.constant 0 : index
    %c0_18 = arith.constant 0 : index
    %13 = vector.load %arg3[%c0_15, %c2_16, %c0_17, %c0_18] : memref<1x3x64x256xbf16, #tpu.memory_space<vmem>>, vector<1x1x64x256xbf16>
    %14 = vector.shape_cast %13 : vector<1x1x64x256xbf16> to vector<64x256xbf16>
    %cst_19 = arith.constant dense<0.000000e+00> : vector<16x256xf32>
    %15 = tpu.matmul %12, %14, %cst_19 {dimension_numbers = #tpu.dot_dimension_numbers<[1], [0], [0], [1], [0, 0, 1, 1], [], []>} : vector<16x64xbf16>, vector<64x256xbf16>, vector<16x256xf32> -> vector<16x256xf32>
    %16 = arith.addf %10, %15 : vector<16x256xf32>
    %c0_20 = arith.constant 0 : index
    %c0_21 = arith.constant 0 : index
    %17 = vector.load %arg4[%c0_20, %c0_21] : memref<1x256xf32, #tpu.memory_space<vmem>>, vector<1x256xf32>
    %18 = vector.broadcast %17 : vector<1x256xf32> to vector<16x256xf32>
    %19 = arith.addf %16, %18 : vector<16x256xf32>
    %cst_22 = arith.constant 0.000000e+00 : f32
    %20 = vector.broadcast %cst_22 : f32 to vector<16x256xf32>
    %21 = arith.maximumf %19, %20 : vector<16x256xf32>
    %c0_23 = arith.constant 0 : index
    %c0_24 = arith.constant 0 : index
    %c0_25 = arith.constant 0 : index
    %c0_26 = arith.constant 0 : index
    %22 = vector.load %arg5[%c0_23, %c0_24, %c0_25, %c0_26] : memref<1x1x16x256xf32, #tpu.memory_space<vmem>>, vector<1x1x16x256xf32>
    %23 = vector.shape_cast %22 : vector<1x1x16x256xf32> to vector<16x256xf32>
    %24 = vector.shape_cast %21 : vector<16x256xf32> to vector<1x1x16x256xf32>
    tpu.vector_store %arg5[%c0_23, %c0_24, %c0_25, %c0_26], %24 {strides = array<i32>} : memref<1x1x16x256xf32, #tpu.memory_space<vmem>>, vector<1x1x16x256xf32>,
    return
  }
  func.func @transform_0(%arg0: i32, %arg1: i32) -> (i32, i32, i32) {
    %c0_i32 = arith.constant 0 : i32
    %c0_i32_0 = arith.constant 0 : i32
    %c0_i32_1 = arith.constant 0 : i32
    return %arg1, %c0_i32, %c0_i32_0 : i32, i32, i32
  }
  func.func @transform_1(%arg0: i32, %arg1: i32) -> (i32, i32, i32, i32) {
    %c0_i32 = arith.constant 0 : i32
    %c0_i32_0 = arith.constant 0 : i32
    %c0_i32_1 = arith.constant 0 : i32
    %c0_i32_2 = arith.constant 0 : i32
    return %arg0, %c0_i32, %c0_i32_0, %c0_i32_1 : i32, i32, i32, i32
  }
  func.func @transform_2(%arg0: i32, %arg1: i32) -> (i32, i32) {
    %c0_i32 = arith.constant 0 : i32
    %c0_i32_0 = arith.constant 0 : i32
    %c0_i32_1 = arith.constant 0 : i32
    return %c0_i32, %c0_i32_0 : i32, i32
  }
  func.func @transform_3(%arg0: i32, %arg1: i32) -> (i32, i32, i32, i32) {
    %c0_i32 = arith.constant 0 : i32
    %c0_i32_0 = arith.constant 0 : i32
    %c0_i32_1 = arith.constant 0 : i32
    return %arg1, %arg0, %c0_i32, %c0_i32_0 : i32, i32, i32, i32
  }
}

</mosaic_0001>

<bundles_post_ra>
// kernel: _lambda_.1
= control target key start
LH: loop header
LB: loop body
LE: loop exit
PB: predicated region body
PF: predicated region fallthrough
CT: control target
= control target key end

     0   :  { %s865_s12 = smov 0   ;;  %s867_s13 = smov 0   ;;  %s965_s0 = inlined_call_operand.vmem [shape: bf16[2,18,64], index: 0, kind: input, shape index: {}]   ;;  %s966_s1 = inlined_call_operand.vmem [shape: bf16[2,3,64,256], index: 1, kind: input, shape index: {}]   ;;  %s967_s2 = inlined_call_operand.vmem [shape: f32[1,256], index: 2, kind: input, shape index: {}]   ;;  %s968_s3 = inlined_call_operand.vmem [shape: f32[2,2,16,256], index: 3, kind: output, shape index: {}]  }
   0x1   :  { %s869_s14 = smov 0   ;;  %s871_s15 = smov 0  }
   0x2   :  { %s873_s16 = smov 0  }
   0x3 LB: > { %s22_s17 = sadd.s32 1, %s834_s14  ;;  %s25_s18 = sadd.s32 1, %s838_s15  ;;  %s842_s16 = sphi %s873_s16, %s13_s16   ;;  %s838_s15 = sphi %s871_s15, %s972_s15   ;;  %s834_s14 = sphi %s869_s14, %s971_s14   ;;  %s830_s13 = sphi %s867_s13, %s970_s13   ;;  %s826_s12 = sphi %s865_s12, %s969_s12  }
   0x4   : > { %p23_p0 = scmp.ge.s32.totalorder %s22_s17, 2  ;;  %p660_p1 = scmp.ge.s32.totalorder %s842_s16, 1 }
   0x5   : > { %p161_p2 = scmp.lt.s32.totalorder %s842_s16, 5 }
   0x6   : > { %s974_s17 = smov (%p23_p0, %s22_s17), 0  ;;  %s976_s18 = smov (!%p23_p0, %s25_s18), %s838_s15 }
   0x7   : > { %p162_p3 = pnand %p660_p1, %p161_p2  ;;  %p27_p4 = scmp.ge.s32.totalorder %s976_s18, 2 }
   0x8   : > { %p199_p5 = scmp.lt.s32.totalorder (!%p162_p3), %s830_s13, 1  ;;  %v844_v0 = vmov (!%p162_p3), 0   ;;  %p194_p6 = scmp.lt.s32.totalorder (!%p162_p3), %s826_s12, 1  ;;  %vm295_vm0 = vcmask (!%p162_p3), 523264   ;;  %vm242_vm1 = vsmask.f32 (!%p162_p3), 7424  ;;  %v536_v41 = vlaneseq (!%p162_p3) }
   0x9   : > { %s978_s18 = smov (%p27_p4, %s976_s18), 0  ;;  %165 = sbr.rel (%p162_p3) target bundleno = 275 (0x113), region = 32 }
   0xa   : > { %416 = vmatprep.mubr.bf16.mxu0 (!%p162_p3), %v844_v0  ;;  %331 = vmatprep.mubr.bf16.mxu1 (!%p162_p3), %v844_v0  ;;  %vm440_vm2 = vcmask (!%p162_p3), 1046528   ;;  %v537_v44 = vshrl.u32 (!%p162_p3), %v536_v41, 7  ;;  %v534_v48 = vld [vmem:[%s967_s2] sm:$0x3] (!%p162_p3) }
   0xc   : > { %v538_v47 = vsub.s32 (!%p162_p3), 0, %v537_v44  ;;  %v542_v49 = vsub.s32 (!%p162_p3), 1, %v537_v44 }
   0xe   : > { %v539_v50 = vrot.slane (!%p162_p3), %v534_v48, %v538_v47  ;;  %v543_v52 = vrot.slane (!%p162_p3), %v534_v48, %v542_v49 }
  0x10   : > { %s980_s13 = smov (!%p199_p5, %s830_s13), 1  ;;  %s982_s12 = smov (!%p194_p6, %s826_s12), 1 }
  0x11   : > { %s723_s19 = smul.u32 192, %s980_s13  ;;  %s663_s27 = sshll.u32 %s980_s13, 2 }
  0x12   : > { %s722_s23 = smul.u32 12, %s982_s12  ;;  %s664_s28 = sshll.u32 %s982_s12, 3 }
  0x13   : > { %s903_s22 = scalar_lea.vmem %s966_s1, %s723_s19  ;;  %s210_s4 = sadd.s32 %s664_s28, %s663_s27 }
  0x14   : > { %v765_v1 = vld [vmem:[%s903_s22 + $0x4] ss:$8 sps:$4 sm:$0xff]   ;;  %v767_v2 = vld [vmem:[%s903_s22] ss:$8 sps:$4 sm:$0xff]   ;;  %v768_v3 = vld [vmem:[%s903_s22 + $0x14] ss:$8 sps:$4 sm:$0xff]   ;;  %s916_s26 = scalar_lea.vmem %s965_s0, %s722_s23 }
  0x15   : > { %384 = vmatprep.subr.bf16.mxu0 %v765_v1  ;;  %v770_v4 = vld [vmem:[%s903_s22 + $0x10] ss:$8 sps:$4 sm:$0xff]   ;;  %v771_v5 = vld [vmem:[%s903_s22 + $0x24] ss:$8 sps:$4 sm:$0xff]   ;;  %v779_v7 = vld [vmem:[%s903_s22 + $0x40] ss:$8 sps:$4 sm:$0xff]  }
  0x16   : > { %385 = vmatpush1.bf16.msra.mxu0 %v767_v2  ;;  %v776_v6 = vld [vmem:[%s903_s22 + $0x44] ss:$8 sps:$4 sm:$0xff]   ;;  %v773_v8 = vld [vmem:[%s903_s22 + $0x20] ss:$8 sps:$4 sm:$0xff]   ;;  %v774_v9 = vld [vmem:[%s903_s22 + $0x34] ss:$8 sps:$4 sm:$0xff]  }
  0x17   : > { %386 = vmatprep.subr.bf16.mxu0 %v768_v3  ;;  %299 = vmatprep.subr.bf16.mxu1 %v776_v6  ;;  %v783_v10 = vld [vmem:[%s903_s22 + $0x54] ss:$8 sps:$4 sm:$0xff]   ;;  %v214_v11 = vld [vmem:[%s916_s26] sm:$0xf]  ;;  %v215_v12 = vld [vmem:[%s916_s26 + $0x4] sm:$0xf] }
  0x18   : > { %300 = vmatpush1.bf16.msra.mxu1 %v779_v7  ;;  %v787_v13 = vld [vmem:[%s903_s22 + $0x50] ss:$8 sps:$4 sm:$0xff]   ;;  %v782_v15 = vld [vmem:[%s903_s22 + $0x84] ss:$8 sps:$4 sm:$0xff]   ;;  %v674_v16 = vcombine.low %v214_v11, %v215_v12  ;;  %v793_v18 = vld [vmem:[%s903_s22 + $0x60] ss:$8 sps:$4 sm:$0xff]  }
  0x19   : > { %301 = vmatprep.subr.bf16.mxu1 %v783_v10  ;;  %v778_v14 = vld [vmem:[%s903_s22 + $0x30] ss:$8 sps:$4 sm:$0xff]   ;;  %v791_v17 = vld [vmem:[%s903_s22 + $0x64] ss:$8 sps:$4 sm:$0xff]   ;;  %v780_v20 = vld [vmem:[%s903_s22 + $0x80] ss:$8 sps:$4 sm:$0xff]  }
  0x1a   : > { %387 = vmatpush1.bf16.msra.mxu0 %v770_v4  ;;  %v246_v19 = vshll.u32 %v674_v16, 16  ;;  %v797_v21 = vld [vmem:[%s903_s22 + $0x74] ss:$8 sps:$4 sm:$0xff]   ;;  %v244_v22 = vshrl.u32 %v674_v16, 16  ;;  %v799_v25 = vld [vmem:[%s903_s22 + $0x70] ss:$8 sps:$4 sm:$0xff]  }
  0x1b   : > { %388 = vmatprep.subr.bf16.mxu0 %v771_v5  ;;  %v790_v24 = vld [vmem:[%s903_s22 + $0x94] ss:$8 sps:$4 sm:$0xff]   ;;  %v803_v26 = vld [vmem:[%s916_s26 + $0x8] ss:$0 sps:$4 sm:$0x11]   ;;  %s665_s5 = sshll.u32 %s210_s4, 3 }
  0x1c   : > { %302 = vmatpush1.bf16.msra.mxu1 %v787_v13  ;;  %v248_v23 = vrot.slane %v246_v19, 1  ;;  %v788_v27 = vld [vmem:[%s903_s22 + $0x90] ss:$8 sps:$4 sm:$0xff]   ;;  %v251_v29 = vshll.u32 %v803_v26, 16  ;;  %v427_v30 = vld [vmem:[%s916_s26] sm:$0xe]  ;;  %s212_s8 = scalar_lea.vmem %s968_s3, %s665_s5 }
  0x1d   : > { %303 = vmatprep.subr.bf16.mxu1 %v791_v17  ;;  %v796_v31 = vld [vmem:[%s903_s22 + $0xa4] ss:$8 sps:$4 sm:$0xff]   ;;  %v702_v33 = vcombine.low %v427_v30, %v215_v12  ;;  %v794_v34 = vld [vmem:[%s903_s22 + $0xa0] ss:$8 sps:$4 sm:$0xff]   ;;  %v802_v36 = vld [vmem:[%s903_s22 + $0xb4] ss:$8 sps:$4 sm:$0xff]  }
  0x1e   : > { %389 = vmatpush1.bf16.msra.mxu0 %v773_v8  ;;  %v249_v28 = vor.u32 %v248_v23, %v244_v22  ;;  %v253_v32 = vrot.slane %v251_v29, 1  ;;  %v800_v38 = vld [vmem:[%s903_s22 + $0xb0] ss:$8 sps:$4 sm:$0xff]   ;;  %v442_v39 = vrot.slane %v803_v26, 1 }
  0x1f   : > { %390 = vmatprep.subr.bf16.mxu0 %v774_v9  ;;  %v441_v37 = vrot.slane %v702_v33, 1 }
  0x20   : > { %304 = vmatpush1.bf16.msra.mxu1 %v793_v18  ;;  %v254_v35 = vsel %vm242_vm1, %v249_v28, %v253_v32 }
  0x21   : > { %305 = vmatprep.subr.bf16.mxu1 %v797_v21  ;;  %v443_v40 = vsel %vm440_vm2, %v441_v37, %v442_v39 }
  0x22   : > { %391 = vmatpush1.bf16.msra.mxu0 %v778_v14 }
  0x23   : > { %487 = vmatprep.subr.bf16.mxu0 %v782_v15 }
  0x24   : > { %306 = vmatpush1.bf16.msra.mxu1 %v799_v25 }
  0x25   : > { %693 = vmatmul.mubr.msk.bf16.vlgmr.msra.gmra.mrb[0].mxu0 %vm295_vm0, %v674_v16 }
  0x26   : > { %488 = vmatpush1.bf16.msra.mxu0 %v780_v20  ;;  %519 = vmatprep.mubr.bf16.mxu0 %v844_v0 }
  0x27   : > { %489 = vmatprep.subr.bf16.mxu0 %v790_v24  ;;  %684 = vmatmul.mubr.msk.bf16.vlgmr.msra.gmra.mrb[0].mxu1 %vm295_vm0, %v254_v35 }
  0x2a   : > { %490 = vmatpush1.bf16.msra.mxu0 %v788_v27 }
  0x2b   : > { %491 = vmatprep.subr.bf16.mxu0 %v796_v31 }
  0x2e   : > { %492 = vmatpush1.bf16.msra.mxu0 %v794_v34 }
  0x2f   : > { %493 = vmatprep.subr.bf16.mxu0 %v802_v36 }
  0x32   : > { %494 = vmatpush1.bf16.msra.mxu0 %v800_v38 }
  0x35   : > { %711 = vmatmul.mubr.msk.bf16.vlgmr.msra.gmra.mrb[0].mxu0 %vm295_vm0, %v443_v40 }
  0xfa   : > { %v333_v42 = vpop.f32.mrb[0].mxu1 }
  0xfb   : > { %v335_v43 = vpop.f32.mrb[1].mxu1 }
  0xfc   : > { %v337_v45 = vpop.f32.mrb[2].mxu1 }
  0xfd   : > { %v339_v46 = vpop.f32.mrb[3].mxu1 }
 0x108   : > { %v521_v51 = vpop.f32.mrb[0].mxu0 }
 0x109   : > { %v714_v53 = vadd.f32 %v521_v51, %v333_v42  ;;  %v523_v54 = vpop.f32.mrb[1].mxu0 }
 0x10a   : > { %v715_v55 = vadd.f32 %v523_v54, %v335_v43  ;;  %v525_v56 = vpop.f32.mrb[2].mxu0 }
 0x10b   : > { %v546_v57 = vadd.f32 %v714_v53, %v539_v50  ;;  %v716_v58 = vadd.f32 %v525_v56, %v337_v45  ;;  %v527_v59 = vpop.f32.mrb[3].mxu0 }
 0x10c   : > { %v547_v60 = vadd.f32 %v715_v55, %v543_v52  ;;  %v717_v61 = vadd.f32 %v527_v59, %v339_v46 }
 0x10d   : > { %v550_v62 = vmax.f32 %v546_v57, 0.0  ;;  %v548_v63 = vadd.f32 %v716_v58, %v539_v50 }
 0x10e   : > { %v551_v0 = vmax.f32 %v547_v60, 0.0  ;;  %v549_v1 = vadd.f32 %v717_v61, %v543_v52 }
 0x10f   : > { %554 = vst [vmem:[%s212_s8] sm:$0xff] %v550_v62  ;;  %v552_v2 = vmax.f32 %v548_v63, 0.0 }
 0x110   : > { %555 = vst [vmem:[%s212_s8 + $0x8] sm:$0xff] %v551_v0  ;;  %v553_v3 = vmax.f32 %v549_v1, 0.0 }
 0x111   : > { %556 = vst [vmem:[%s212_s8 + $0x10] sm:$0xff] %v552_v2 }
 0x112   : > { %557 = vst [vmem:[%s212_s8 + $0x18] sm:$0xff] %v553_v3 }
 0x113 PF: > { %s13_s16 = sadd.s32 1, %s842_s16   ;;  %s969_s12 = smov %s834_s14 }
 0x114   : > { %p10_p7 = scmp.ge.s32.totalorder %s13_s16, 6   ;;  %s970_s13 = smov %s838_s15 }
 0x115   : > { %s971_s14 = smov %s974_s17  ;;  %s972_s15 = smov %s978_s18 }
 0x116   :  { %12 = sbr.rel (!%p10_p7) target bundleno = 3 (0x3), region = 67 }

</bundles_post_ra>
